<compile_context>
chip_gen: v7x
topology: tpu7x:2x2x1
jax: 0.10.0
libtpu: 0.0.40
codegen_flags: <defaults>
</compile_context>

<pallas_src>
import functools

import jax
import jax.numpy as jnp
from jax.experimental import pallas as pl
from jax.experimental.pallas import tpu as pltpu


def _round_up(a: int, b: int) -> int:
    return ((a + b - 1) // b) * b


def _pow_int(x, n: int):
    """x ** n for a small positive Python int, using only VPU multiplies."""
    acc = None
    base = x
    while n > 0:
        if n & 1:
            acc = base if acc is None else acc * base
        n >>= 1
        if n:
            base = base * base
    return acc


def _gem_body(x_ref, o_ref, p, *, eps, inv_hw, int_p):
    # x_ref: (tile_rows, hw) block of the flattened (rows, H*W) input in VMEM.
    # o_ref: (1, 1, tile_rows) lane-dense pooled-output block in VMEM.
    x = x_ref[...].astype(jnp.float32)
    xc = jnp.maximum(x, eps)                       # clamp(min=eps)
    if int_p is not None:
        xp = _pow_int(xc, int_p)                   # VPU-only fast path
    else:
        xp = jnp.power(xc, p)                      # runtime exponent: log+exp on EUP
    s = jnp.sum(xp, axis=-1, keepdims=True)        # (tile_rows, 1) row sums (XLU)
    # Transpose into the lane axis BEFORE the mean scale + root: the final pow
    # then touches one dense (1, tile_rows) vector (not a 1/128-utilized column)
    # and the store is an unmasked lane-dense vst.
    s_lane = jnp.transpose(s)[None, :, :]          # (1, 1, tile_rows)
    y = jnp.power(s_lane * inv_hw, 1.0 / p)
    o_ref[...] = y.astype(o_ref.dtype)


def _gem_kernel_dynamic(p_ref, x_ref, o_ref, *, eps, inv_hw):
    # p_ref: (1,) f32 learnable exponent in SMEM.
    _gem_body(x_ref, o_ref, p_ref[0], eps=eps, inv_hw=inv_hw, int_p=None)


def _gem_kernel_static(x_ref, o_ref, *, eps, inv_hw, p):
    int_p = int(p) if (float(p) == int(p) and 1 <= int(p) <= 16) else None
    _gem_body(x_ref, o_ref, jnp.float32(p), eps=eps, inv_hw=inv_hw, int_p=int_p)


def _choose_tile_rows(rows: int, hw: int, itemsize: int) -> int:
    """Row-tile size: ~12 MiB (lane-padded) input block, multiple of 8
    (128 when large), >= 2 grid steps when there is enough work, never
    exceeding the number of rows (so no block dim ever exceeds the array)."""
    if rows <= 8:
        return rows
    lane_w = _round_up(hw, 128)
    budget = 12 * 1024 * 1024                      # per block; 2 bufs stay < v7x VMEM
    cap = max(8, (budget // (lane_w * itemsize)) // 8 * 8)
    tile = min(cap, (rows // 8) * 8)
    if tile >= rows and rows >= 16:
        # Split so v7x's two TensorCores both get at least one tile.
        tile = _round_up((rows + 1) // 2, 8)
    if tile >= 128:
        tile = (tile // 128) * 128                 # lane-dense output stores
    return tile


def gem_pallas(x, p, eps=1e-6):
    """GeM pooling. x: (N, C, H, W); p: learnable scalar array or Python number."""
    N, C, H, W = x.shape
    rows = N * C
    hw = H * W
    xf = x.reshape(rows, hw)
    itemsize = xf.dtype.itemsize

    tile_rows = _choose_tile_rows(rows, hw, itemsize)
    num_tiles = pl.cdiv(rows, tile_rows)

    lane_w = _round_up(hw, 128)
    block_bytes = tile_rows * lane_w * itemsize
    vmem_limit = int(min(56 * 2**20, max(16 * 2**20, 2 * block_bytes + 4 * 2**20)))

    inv_hw = 1.0 / float(hw)
    n_elem = rows * hw
    static_p = isinstance(p, (int, float))
    static_int = static_p and float(p) == int(p) and 1 <= int(p) <= 16

    x_spec = pl.BlockSpec((tile_rows, hw), lambda i: (i, 0))
    out_spec = pl.BlockSpec((1, 1, tile_rows), lambda i: (i, 0, 0))

    if static_p:
        kernel = functools.partial(_gem_kernel_static, eps=float(eps),
                                   inv_hw=inv_hw, p=float(p))
        in_specs = [x_spec]
        args = (xf,)
    else:
        kernel = functools.partial(_gem_kernel_dynamic, eps=float(eps),
                                   inv_hw=inv_hw)
        in_specs = [pl.BlockSpec(memory_space=pltpu.MemorySpace.SMEM), x_spec]
        args = (jnp.asarray(p, jnp.float32).reshape(1), xf)

    transcendentals = rows if static_int else 2 * n_elem + 2 * rows

    out = pl.pallas_call(
        kernel,
        out_shape=jax.ShapeDtypeStruct((num_tiles, 1, tile_rows), x.dtype),
        grid=(num_tiles,),
        in_specs=in_specs,
        out_specs=out_spec,
        compiler_params=pltpu.CompilerParams(
            dimension_semantics=("parallel",),
            vmem_limit_bytes=vmem_limit,
        ),
        cost_estimate=pl.CostEstimate(
            flops=3 * n_elem,
            transcendentals=transcendentals,
            bytes_accessed=n_elem * itemsize + rows * x.dtype.itemsize,
        ),
    )(*args)

    # Rows in the padded tail of the last tile are garbage; slice them off.
    return out.reshape(num_tiles * tile_rows)[:rows].reshape(N, C, 1, 1)


if __name__ == "__main__":
    key = jax.random.PRNGKey(0)
    eps = 1e-6

    # Learnable exponent, matching nn.Parameter(torch.ones(1) * 3).
    p_param = jnp.ones((1,), jnp.float32) * 3.0

    # Small NCHW conv feature map.
    x = jax.random.normal(key, (2, 4, 16, 16), dtype=jnp.float32)

    # Dynamic (learnable-p) path.
    y = gem_pallas(x, p_param, eps=eps)
    y = jax.block_until_ready(y)

    # Static-p (frozen inference) fast path.
    y_static = gem_pallas(x, 3, eps=eps)
    y_static = jax.block_until_ready(y_static)

    # Pure-JAX reference matching the PyTorch module.
    p_val = p_param[0]
    ref = jnp.power(
        jnp.mean(jnp.power(jnp.maximum(x, eps), p_val), axis=(2, 3), keepdims=True),
        1.0 / p_val,
    )
    assert y.shape == (2, 4, 1, 1)
    assert jnp.allclose(y, ref, rtol=1e-5, atol=1e-5), "dynamic-p mismatch vs reference"
    assert jnp.allclose(y_static, ref, rtol=1e-5, atol=1e-5), "static-p mismatch vs reference"

    print("KERNEL_OK")
</pallas_src>

<mosaic_0001>
module attributes {stable_mosaic.version = 11 : i64} {
  func.func @_gem_kernel_dynamic(%arg0: i32, %arg1: memref<1xf32, #tpu.memory_space<smem>>, %arg2: memref<8x256xf32, #tpu.memory_space<vmem>>, %arg3: memref<1x1x8xf32, #tpu.memory_space<vmem>>) attributes {dimension_semantics = [#tpu.dimension_semantics<parallel>], iteration_bounds = array<i64: 1>, scalar_prefetch = 0 : i64, scratch_operands = 0 : i64, tpu.core_type = #tpu.core_type<tc>, window_params = [{transform_indices = @transform_0, window_bounds = array<i64: 1>}, {transform_indices = @transform_1, window_bounds = array<i64: 8, 256>}, {transform_indices = @transform_2, window_bounds = array<i64: 1, 1, 8>}]} {
    %c0 = arith.constant 0 : index
    %0 = memref.load %arg1[%c0] : memref<1xf32, #tpu.memory_space<smem>>
    %c0_0 = arith.constant 0 : index
    %c0_1 = arith.constant 0 : index
    %1 = vector.load %arg2[%c0_0, %c0_1] : memref<8x256xf32, #tpu.memory_space<vmem>>, vector<8x256xf32>
    %cst = arith.constant 9.99999997E-7 : f32
    %2 = vector.broadcast %cst : f32 to vector<8x256xf32>
    %3 = arith.maximumf %1, %2 : vector<8x256xf32>
    %4 = vector.broadcast %0 : f32 to vector<8x256xf32>
    %5 = math.powf %3, %4 : vector<8x256xf32>
    %cst_2 = arith.constant dense<0.000000e+00> : vector<8xf32>
    %6 = vector.multi_reduction <add>, %5, %cst_2 [1] : vector<8x256xf32> to vector<8xf32>
    %7 = vector.shape_cast %6 : vector<8xf32> to vector<8x1xf32>
    %8 = tpu.transpose %7, [1, 0] : vector<8x1xf32> -> vector<1x8xf32>
    %9 = vector.shape_cast %8 : vector<1x8xf32> to vector<1x1x8xf32>
    %cst_3 = arith.constant 3.906250e-03 : f32
    %10 = vector.broadcast %cst_3 : f32 to vector<1x1x8xf32>
    %11 = arith.mulf %9, %10 : vector<1x1x8xf32>
    %cst_4 = arith.constant 1.000000e+00 : f32
    %12 = arith.divf %cst_4, %0 : f32
    %13 = vector.broadcast %12 : f32 to vector<1x1x8xf32>
    %14 = math.powf %11, %13 : vector<1x1x8xf32>
    %c0_5 = arith.constant 0 : index
    %c0_6 = arith.constant 0 : index
    %c0_7 = arith.constant 0 : index
    %15 = vector.load %arg3[%c0_5, %c0_6, %c0_7] : memref<1x1x8xf32, #tpu.memory_space<vmem>>, vector<1x1x8xf32>
    tpu.vector_store %arg3[%c0_5, %c0_6, %c0_7], %14 {strides = array<i32>} : memref<1x1x8xf32, #tpu.memory_space<vmem>>, vector<1x1x8xf32>,
    return
  }
  func.func @transform_0(%arg0: i32) -> i32 {
    %c0_i32 = arith.constant 0 : i32
    %c0_i32_0 = arith.constant 0 : i32
    return %c0_i32 : i32
  }
  func.func @transform_1(%arg0: i32) -> (i32, i32) {
    %c0_i32 = arith.constant 0 : i32
    %c0_i32_0 = arith.constant 0 : i32
    return %arg0, %c0_i32 : i32, i32
  }
  func.func @transform_2(%arg0: i32) -> (i32, i32, i32) {
    %c0_i32 = arith.constant 0 : i32
    %c0_i32_0 = arith.constant 0 : i32
    %c0_i32_1 = arith.constant 0 : i32
    return %arg0, %c0_i32, %c0_i32_0 : i32, i32, i32
  }
}

</mosaic_0001>

<bundles_post_ra>
// kernel: tpu_custom_call.1
= control target key start
LH: loop header
LB: loop body
LE: loop exit
PB: predicated region body
PF: predicated region fallthrough
CT: control target
= control target key end

     0   :  { %8 = vsyncpa [#allocation4], 0  ;;  %s550_s0 = inlined_call_operand.<no memory space> [shape: f32[1], index: 0, kind: input, shape index: {}]   ;;  %s551_s1 = inlined_call_operand.hbm [shape: f32[8,256], index: 1, kind: input, shape index: {}]   ;;  %s552_s2 = inlined_call_operand.hbm [shape: f32[1,1,8], index: 2, kind: output, shape index: {}]  }
   0x1   :  { %9 = vsyncpa [#allocation5], 0  ;;  %s316_s9 = smov [#allocation3]   ;;  %s268_s13 = scalar_lea.hbm %s551_s1, 256 }
   0x2   :  { %s18_s10 = sshll.u32 %s316_s9, 4  ;;  %p269_p0 = scmp.ne.s32.totalorder %s551_s1, %s268_s13  ;;  %s19_s10 = int_to_ptr.vmem [resolvable:$true] %s18_s10 }
   0x3   :  { %p272_p1 = scmp.lt.u32.totalorder %s268_s13, %s551_s1 }
   0x5   :  { %p274_p2 = pnand %p272_p1, %p269_p0 }
   0x7   :  { %277 = shalt.err (!%p274_p2)
}
   0x8   :  { %s278_s18 = scalar_lea.vmem %s19_s10, 256  ;;  %p283_p4 = scmp.lt.s32.totalorder %s19_s10, %s19_s10 }
   0x9   :  { %p279_p3 = scmp.ne.s32.totalorder %s19_s10, %s278_s18  ;;  %p284_p5 = scmp.lt.s32.totalorder %s278_s18, %s278_s18 }
   0xb   :  { %p285_p6 = por %p284_p5, %p283_p4 }
   0xd   :  { %p286_p7 = pnand %p285_p6, %p279_p3 }
   0xf   :  { %289 = shalt.err (!%p286_p7)
}
  0x10   :  { %21 = dma.hbm_to_vmem [thread:$0]  %s551_s1, 256, %s19_s10, [#allocation4]  }
  0x11   :  { %312 = dma.done.wait [#allocation4], 256  }
  0x12   :  { %313 = vsyncadd [#allocation4], 4294967040  ;;  %v350_v0 = vstv %s550_s0  ;;  %v26_v2 = vld [vmem:[#allocation3] sm:$0xff]  ;;  %v27_v3 = vld [vmem:[#allocation3 + $0x8] sm:$0xff]  ;;  %v317_v20 = vmov 2139095040   ;;  %v318_v26 = vmov 0  }
  0x13   :  { %v353_v1 = vand.u32 2147483647, %v350_v0  ;;  %v355_v4 = vmax.f32 %v26_v2, 1e-06  ;;  %v357_v5 = vmax.f32 %v27_v3, 1e-06  ;;  %v100_v8 = vtrunc.f32 %v350_v0 }
  0x14   :  { %vm99_vm7 = vcmp.lt.f32.partialorder %v350_v0, 0  ;;  %s319_s1 = smov [#allocation6]  }
  0x15   :  { %v104_v6 = vtrunc.f32 %v353_v1  ;;  %v361_v7 = vand.u32 2147483647, %v355_v4  ;;  %v365_v9 = vand.u32 2147483647, %v357_v5  ;;  %vm553_vm0 = vcmp.eq.f32.partialorder %v353_v1, 2139095040  ;;  %s82_s23 = sshll.u32 %s319_s1, 4  ;;  %s83_s23 = int_to_ptr.vmem [resolvable:$true] %s82_s23 }
  0x16   :  { %vm101_vm1 = vcmp.ne.f32.partialorder %v350_v0, %v100_v8  ;;  %vm103_vm5 = vcmp.lt.f32.partialorder %v353_v1, 1266679808  ;;  %vm112_vm8 = vcmp.eq.f32.partialorder %v355_v4, 0  ;;  %vm164_vm11 = vcmp.eq.f32.partialorder %v357_v5, 0  ;;  %s290_s24 = scalar_lea.vmem %s83_s23, 16  ;;  %s294_s25 = scalar_lea.vmem %s83_s23, 32 }
  0x17   :  { %254 = vlog2.f32 %v361_v7  ;;  %v105_v10 = vcvt.f32.s32 %v104_v6  ;;  %vm373_vm2 = vmor %vm101_vm1, %vm553_vm0  ;;  %vm115_vm9 = vcmp.gt.f32.partialorder %v361_v7, 1065353216  ;;  %vm167_vm13 = vcmp.gt.f32.partialorder %v365_v9, 1065353216  ;;  %p291_p8 = scmp.ne.s32.totalorder %s83_s23, %s290_s24  ;;  %p295_p9 = scmp.lt.s32.totalorder %s83_s23, %s83_s23 }
  0x18   :  { %256 = vlog2.f32 %v365_v9  ;;  %vm108_vm4 = vmneg %vm373_vm2  ;;  %vm554_vm14 = vcmp.lt.f32.partialorder %v355_v4, 0  ;;  %v131_v21 = vsel %vm99_vm7, 0, %v317_v20  ;;  %vm114_vm0 = vcmp.lt.s32.totalorder %v355_v4, 0  ;;  %p296_p10 = scmp.lt.s32.totalorder %s294_s25, %s290_s24 }
  0x19   :  { %v106_v11 = vand.u32 1, %v105_v10  ;;  %vm394_vm12 = vmand %vm99_vm7, %vm112_vm8  ;;  %v132_v25 = vxor.u32 2147483648, %v131_v21  ;;  %v119_v27 = vsel %vm99_vm7, 2139095040, %v318_v26 }
  0x1a   :  { %vm402_vm15 = vmxor %vm99_vm7, %vm115_vm9  ;;  %p297_p11 = por %p296_p10, %p295_p9 }
  0x1b   :  { %vm107_vm3 = vcmp.eq.s32.totalorder %v106_v11, 1  ;;  %vm413_vm1 = vmand %vm99_vm7, %vm164_vm11 }
  0x1c   :  { %vm109_vm6 = vmand %vm107_vm3, %vm108_vm4  ;;  %p298_p12 = pnand %p297_p11, %p291_p8 }
  0x1d   :  { %vm385_vm10 = vmand %vm103_vm5, %vm109_vm6  ;;  %vm555_vm5 = vcmp.lt.f32.partialorder %v357_v5, 0 }
  0x1e   :  { %vm419_vm3 = vmxor %vm99_vm7, %vm167_vm13  ;;  %vm97_vm13 = vcmp.eq.f32.partialorder %v350_v0, 0  ;;  %vm166_vm7 = vcmp.lt.s32.totalorder %v357_v5, 0  ;;  %v133_v33 = vsel %vm385_vm10, %v132_v25, %v131_v21 }
  0x1f   :  { %vm427_vm4 = vmand %vm554_vm14, %vm373_vm2  ;;  %vm137_vm14 = vcmp.ne.f32.partialorder %v350_v0, %v350_v0 }
  0x20   :  { %vm126_vm6 = vmor %vm394_vm12, %vm402_vm15  ;;  %vm128_vm15 = vcmp.eq.f32.partialorder %v355_v4, 3212836864 }
  0x21   :  { %v255_v13 = vpop.eup %254  ;;  %vm178_vm9 = vmor %vm413_vm1, %vm419_vm3  ;;  %v127_v30 = vsel %vm126_vm6, 2139095040, %v318_v26  ;;  %vm136_vm1 = vcmp.ne.f32.partialorder %v355_v4, %v355_v4  ;;  %vm113_vm3 = vcmp.eq.f32.partialorder %v355_v4, 1065353216  ;;  %vm116_vm6 = vcmp.eq.f32.partialorder %v361_v7, 2139095040 }
  0x22   :  { %v257_v14 = vpop.eup %256  ;;  %v93_v15 = vmul.f32 %v255_v13, %v350_v0  ;;  %vm451_vm12 = vmand %vm555_vm5, %vm373_vm2  ;;  %v179_v34 = vsel %vm178_vm9, 2139095040, %v318_v26  ;;  %vm180_vm2 = vcmp.eq.f32.partialorder %v357_v5, 3212836864  ;;  %v129_v38 = vsel %vm128_vm15, 1065353216, %v127_v30 }
  0x23   :  { %v145_v16 = vmul.f32 %v257_v14, %v350_v0  ;;  %vm121_vm5 = vmand %vm114_vm0, %vm385_vm10  ;;  %vm188_vm9 = vcmp.ne.f32.partialorder %v357_v5, %v357_v5  ;;  %v181_v43 = vsel %vm180_vm2, 1065353216, %v179_v34  ;;  %vm575_vm15 = vcmp.lt.f32.partialorder %v357_v5, 0 }
  0x24   :  { %258 = vpow2.f32 %v93_v15  ;;  %vm490_vm0 = vmor %vm136_vm1, %vm137_vm14  ;;  %v186_v45 = vsel %vm575_vm15, %v133_v33, %v131_v21  ;;  %vm576_vm1 = vcmp.eq.f32.partialorder %v353_v1, 2139095040 }
  0x25   :  { %260 = vpow2.f32 %v145_v16  ;;  %vm577_vm2 = vmmov %vm576_vm1 }
  0x26   :  { %262 = vrcp.f32 %v350_v0 }
  0x2e   :  { %v259_v29 = vpop.eup %258 }
  0x2f   :  { %v261_v31 = vpop.eup %260  ;;  %v118_v32 = vsel %vm427_vm4, 2143289344, %v259_v29  ;;  %vm173_vm4 = vmand %vm166_vm7, %vm385_vm10 }
  0x30   :  { %v120_v35 = vsel %vm112_vm8, %v119_v27, %v118_v32  ;;  %v170_v36 = vsel %vm451_vm12, 2143289344, %v261_v31  ;;  %vm572_vm8 = vcmp.lt.f32.partialorder %v355_v4, 0  ;;  %vm140_vm10 = vmor %vm113_vm3, %vm97_vm13  ;;  %vm168_vm12 = vcmp.eq.f32.partialorder %v365_v9, 2139095040  ;;  %v263_v58 = vpop.eup %262 }
  0x31   :  { %v122_v37 = vxor.u32 2147483648, %v120_v35  ;;  %v172_v39 = vsel %vm164_vm11, %v119_v27, %v170_v36  ;;  %v134_v40 = vsel %vm572_vm8, %v133_v33, %v131_v21  ;;  %vm165_vm11 = vcmp.eq.f32.partialorder %v357_v5, 1065353216  ;;  %vm190_vm7 = vmor %vm188_vm9, %vm137_vm14  ;;  %195 = vpush %v263_v58 }
  0x32   :  { %v174_v42 = vxor.u32 2147483648, %v172_v39  ;;  %vm192_vm3 = vmor %vm165_vm11, %vm97_vm13 }
  0x33   :  { %v123_v44 = vsel %vm121_vm5, %v122_v37, %v120_v35  ;;  %vm98_vm5 = vcmp.eq.f32.partialorder %v350_v0, 1065353216 }
  0x34   :  { %v130_v46 = vsel %vm576_vm1, %v129_v38, %v123_v44  ;;  %v175_v47 = vsel %vm173_vm4, %v174_v42, %v172_v39 }
  0x35   :  { %v135_v48 = vsel %vm116_vm6, %v134_v40, %v130_v46  ;;  %v182_v49 = vsel %vm577_vm2, %v181_v43, %v175_v47 }
  0x36   :  { %v139_v50 = vsel %vm490_vm0, 2143289344, %v135_v48  ;;  %v187_v51 = vsel %vm168_vm12, %v186_v45, %v182_v49 }
  0x37   :  { %v141_v52 = vsel %vm140_vm10, 1065353216, %v139_v50  ;;  %v191_v53 = vsel %vm190_vm7, 2143289344, %v187_v51 }
  0x38   :  { %v142_v54 = vsel %vm98_vm5, %v355_v4, %v141_v52  ;;  %v193_v55 = vsel %vm192_vm3, 1065353216, %v191_v53 }
  0x39   :  { %v194_v56 = vsel %vm98_vm5, %v357_v5, %v193_v55 }
  0x3a   :  { %v33_v57 = vadd.f32 %v194_v56, %v142_v54 }
  0x3c   :  { %34 = vadd.xlane.f32.xlu0 %v33_v57 }
  0x62   :  { %s196_s0 = spop %195 }
  0x63   :  { %v72_v60 = vstv %s196_s0 }
  0x64   :  { %v201_v63 = vand.u32 2147483647, %v72_v60  ;;  %v206_v3 = vtrunc.f32 %v72_v60  ;;  %vm205_vm8 = vcmp.lt.f32.partialorder %v72_v60, 0 }
  0x65   :  { %v237_v8 = vsel %vm205_vm8, 0, %v317_v20  ;;  %v225_v12 = vsel %vm205_vm8, 2139095040, %v318_v26 }
  0x66   :  { %v210_v2 = vtrunc.f32 %v201_v63  ;;  %vm202_vm14 = vcmp.eq.f32.partialorder %v201_v63, 2139095040  ;;  %vm207_vm13 = vcmp.ne.f32.partialorder %v72_v60, %v206_v3  ;;  %vm209_vm11 = vcmp.lt.f32.partialorder %v201_v63, 1266679808 }
  0x67   :  { %vm520_vm6 = vmor %vm207_vm13, %vm202_vm14  ;;  %v238_v9 = vxor.u32 2147483648, %v237_v8 }
  0x68   :  { %v211_v4 = vcvt.f32.s32 %v210_v2  ;;  %vm214_vm9 = vmneg %vm520_vm6 }
  0x6a   :  { %v212_v6 = vand.u32 1, %v211_v4 }
  0x6c   :  { %vm213_vm4 = vcmp.eq.s32.totalorder %v212_v6, 1 }
  0x6d   :  { %vm215_vm10 = vmand %vm213_vm4, %vm214_vm9 }
  0x6e   :  { %vm216_vm1 = vmand %vm209_vm11, %vm215_vm10  ;;  %vm243_vm11 = vcmp.ne.f32.partialorder %v72_v60, %v72_v60  ;;  %vm203_vm10 = vcmp.eq.f32.partialorder %v72_v60, 0 }
  0x6f   :  { %v239_v16 = vsel %vm216_vm1, %v238_v9, %v237_v8 }
  0xc9   :  { %v35_v59 = vpop.xlane.xlu0 %34 }
  0xca   :  { %36 = vxpose.xlu0.b32.start.end [1/1] (short) (narrow) %v35_v59, 8 }
 0x14a   :  { %v52_v61 = vpop.trf.xlu0 }
 0x14b   :  { %v68_v62 = vmul.f32 0.00390625, %v52_v61 }
 0x14d   :  { %v197_v1 = vand.u32 2147483647, %v68_v62  ;;  %vm218_vm12 = vcmp.eq.f32.partialorder %v68_v62, 0  ;;  %vm217_vm7 = vcmp.lt.f32.partialorder %v68_v62, 0  ;;  %vm220_vm13 = vcmp.lt.s32.totalorder %v68_v62, 0 }
 0x14e   :  { %vm230_vm5 = vmand %vm205_vm8, %vm218_vm12  ;;  %vm234_vm9 = vcmp.eq.f32.partialorder %v68_v62, 3212836864  ;;  %v240_v20 = vsel %vm217_vm7, %v239_v16, %v237_v8 }
 0x14f   :  { %264 = vlog2.f32 %v197_v1  ;;  %vm221_vm0 = vcmp.gt.f32.partialorder %v197_v1, 1065353216  ;;  %vm223_vm3 = vmand %vm217_vm7, %vm520_vm6 }
 0x150   :  { %vm231_vm15 = vmxor %vm205_vm8, %vm221_vm0  ;;  %vm242_vm0 = vcmp.ne.f32.partialorder %v68_v62, %v68_v62 }
 0x151   :  { %vm232_vm2 = vmor %vm230_vm5, %vm231_vm15  ;;  %vm219_vm15 = vcmp.eq.f32.partialorder %v68_v62, 1065353216  ;;  %vm222_vm5 = vcmp.eq.f32.partialorder %v197_v1, 2139095040 }
 0x152   :  { %v233_v14 = vsel %vm232_vm2, 2139095040, %v318_v26  ;;  %vm227_vm4 = vmand %vm220_vm13, %vm216_vm1  ;;  %vm204_vm1 = vcmp.eq.f32.partialorder %v72_v60, 1065353216 }
 0x153   :  { %v235_v18 = vsel %vm234_vm9, 1065353216, %v233_v14  ;;  %vm244_vm6 = vmor %vm242_vm0, %vm243_vm11 }
 0x154   :  { %vm246_vm8 = vmor %vm219_vm15, %vm203_vm10 }
 0x159   :  { %v265_v5 = vpop.eup %264 }
 0x15a   :  { %v199_v7 = vmul.f32 %v265_v5, %v72_v60 }
 0x15c   :  { %266 = vpow2.f32 %v199_v7 }
 0x166   :  { %v267_v10 = vpop.eup %266 }
 0x167   :  { %v224_v11 = vsel %vm223_vm3, 2143289344, %v267_v10 }
 0x168   :  { %v226_v13 = vsel %vm218_vm12, %v225_v12, %v224_v11  ;;  %vm74_vm12 = vcmask 57344  }
 0x169   :  { %v228_v15 = vxor.u32 2147483648, %v226_v13 }
 0x16b   :  { %v229_v17 = vsel %vm227_vm4, %v228_v15, %v226_v13 }
 0x16c   :  { %v236_v19 = vsel %vm202_vm14, %v235_v18, %v229_v17 }
 0x16d   :  { %v241_v21 = vsel %vm222_vm5, %v240_v20, %v236_v19 }
 0x16e   :  { %v245_v22 = vsel %vm244_vm6, 2143289344, %v241_v21 }
 0x16f   :  { %v247_v23 = vsel %vm246_vm8, 1065353216, %v245_v22 }
 0x170   :  { %v248_v24 = vsel %vm204_vm1, %v68_v62, %v247_v23 }
 0x171   :  { %75 = vst.msk [vmem:[#allocation6] sm:$0x1] %vm74_vm12, %v248_v24 }
 0x172   :  { %301 = shalt.err (!%p298_p12)
}
 0x173   :  { %s302_s28 = scalar_lea.hbm %s552_s2, 16 }
 0x174   :  { %p303_p13 = scmp.ne.s32.totalorder %s552_s2, %s302_s28  ;;  %p306_p0 = scmp.lt.u32.totalorder %s302_s28, %s552_s2 }
 0x176   :  { %p308_p1 = pnand %p306_p0, %p303_p13 }
 0x178   :  { %311 = shalt.err (!%p308_p1)
}
 0x179   :  { %85 = dma.vmem_to_hbm [thread:$0]  %s83_s23, 16, %s552_s2, [#allocation5]  }
 0x17a   :  { %314 = dma.done.wait [#allocation5], 16  }
 0x17b   :  { %315 = vsyncadd [#allocation5], 4294967280 }
 0x17c   :  { %89 = vsyncpa [#allocation4], 1 }
 0x17d   :  { %90 = vsyncpa [#allocation5], 1 }

</bundles_post_ra>
